<compile_context>
chip_gen: v7x
topology: tpu7x:2x2x1
jax: 0.10.0
libtpu: 0.0.40
codegen_flags: <defaults>
</compile_context>

<pallas_src>
import jax
import jax.numpy as jnp
from jax.experimental import pallas as pl
from jax.experimental.pallas import tpu as pltpu


def _round_up(x, m):
    return (x + m - 1) // m * m


# ---------------------------------------------------------------------------
# Kernel body: one batch tile through the whole MLP.
#   x_ref  : (TB, Din_p)   f32 activation tile (streams per grid step)
#   w*_ref : (in_p, out_p) padded, pre-transposed weights (VMEM-resident)
#   b_ref  : (8, Dmax)     packed biases, rows 0/1/2 = b1/b2/b3 (VMEM-resident)
#   out_ref: (TB, Dout_p)  f32 (lane-dense store)
# ---------------------------------------------------------------------------
def _dqn_kernel(x_ref, w1_ref, w2_ref, w3_ref, b_ref, out_ref):
    d1 = w1_ref.shape[1]
    d2 = w2_ref.shape[1]
    dout = w3_ref.shape[1]

    # bf16 operands hit the MXU-native path; f32 accumulation keeps error tiny.
    x = x_ref[...].astype(w1_ref.dtype)

    h1 = jnp.dot(x, w1_ref[...], preferred_element_type=jnp.float32)
    h1 = jnp.maximum(h1 + b_ref[0:1, :d1], 0.0)

    h2 = jnp.dot(h1.astype(w2_ref.dtype), w2_ref[...],
                 preferred_element_type=jnp.float32)
    h2 = jnp.maximum(h2 + b_ref[1:2, :d2], 0.0)

    out = jnp.dot(h2.astype(w3_ref.dtype), w3_ref[...],
                  preferred_element_type=jnp.float32)
    out_ref[...] = (out + b_ref[2:3, :dout]).astype(out_ref.dtype)


def prepare_params(params, *, weight_dtype=jnp.bfloat16):
    """One-time preprocessing of PyTorch-style params (call ONCE, not per forward).

    Transposes each (out, in) weight to (in, out), zero-pads each width to its own
    multiple of 128, casts weights to `weight_dtype` (bf16 by default, MXU-native),
    and packs the three biases (f32) into one (8, Dmax) buffer.  Zero padding keeps
    the math exact: padded activation columns stay 0 through bias + ReLU.
    """
    input_dims = params["w1"].shape[1]
    fc1_dims = params["w1"].shape[0]
    fc2_dims = params["w2"].shape[0]
    n_actions = params["w3"].shape[0]

    din_p = _round_up(input_dims, 128)
    d1_p = _round_up(fc1_dims, 128)
    d2_p = _round_up(fc2_dims, 128)
    dout_p = _round_up(n_actions, 128)
    dmax = max(d1_p, d2_p, dout_p)

    def pad_w(w, rows, cols):  # torch (out, in) -> padded (in_p, out_p)
        wt = jnp.asarray(w, jnp.float32).T
        out = jnp.zeros((rows, cols), jnp.float32)
        out = out.at[: wt.shape[0], : wt.shape[1]].set(wt)
        return out.astype(weight_dtype)

    w1 = pad_w(params["w1"], din_p, d1_p)
    w2 = pad_w(params["w2"], d1_p, d2_p)
    w3 = pad_w(params["w3"], d2_p, dout_p)

    b = jnp.zeros((8, dmax), jnp.float32)
    b = b.at[0, :fc1_dims].set(jnp.asarray(params["b1"], jnp.float32))
    b = b.at[1, :fc2_dims].set(jnp.asarray(params["b2"], jnp.float32))
    b = b.at[2, :n_actions].set(jnp.asarray(params["b3"], jnp.float32))

    return {
        "w1": w1, "w2": w2, "w3": w3, "b": b,
        "input_dims": input_dims, "n_actions": n_actions,
        "din_p": din_p, "d1_p": d1_p, "d2_p": d2_p, "dout_p": dout_p, "dmax": dmax,
    }


def _pick_block_batch(batch, widest, block_batch):
    """Batch-tile size: multiple of 8, MXU-filling, VMEM-aware, megacore-aware."""
    if block_batch is None:
        tb = 256  # fills the 256-wide MXU rows on v6e/v7x; >=128 saturates v5e
        # Keep per-tile f32 intermediates (TB x widest x 4B) around <= 2 MiB so they
        # don't spill-thrash against the load/store slots.
        vmem_cap = max(128, ((2 << 20) // (4 * max(widest, 128))) // 8 * 8)
        tb = min(tb, vmem_cap)
    else:
        tb = max(8, int(block_batch))
    tb = _round_up(tb, 8)                 # f32 (8,128) sublane tiling constraint
    tb = min(tb, _round_up(batch, 8))     # no tile bigger than the padded batch
    # v7x megacore: ensure >=2 tiles on the "parallel" batch axis when batch is big
    # enough so both TensorCores get work (harmless on single-TC v5e/v6e).
    batch_p = _round_up(batch, tb)
    if batch_p >= 512 and batch_p // tb < 2:
        tb = max(256, _round_up(tb // 2, 8))
    return tb


def deep_q_network_forward(state, prepared, *, block_batch=None):
    """Forward pass.  state: (batch, input_dims) f32; prepared: from prepare_params."""
    batch, in_dims = state.shape
    if in_dims != prepared["input_dims"]:
        raise ValueError(f"state has {in_dims} features, expected {prepared['input_dims']}")

    din_p, d1_p = prepared["din_p"], prepared["d1_p"]
    d2_p, dout_p, dmax = prepared["d2_p"], prepared["dout_p"], prepared["dmax"]
    n_actions = prepared["n_actions"]
    w1, w2, w3, b = prepared["w1"], prepared["w2"], prepared["w3"], prepared["b"]

    widest = max(din_p, d1_p, d2_p, dout_p)
    tb = _pick_block_batch(batch, widest, block_batch)
    batch_p = _round_up(batch, tb)
    grid = (batch_p // tb,)

    # Lane-aligned, zero-padded activation slab — only Din_p lanes wide.  Padded
    # columns / rows stay exactly zero through the net and are sliced off at the end.
    x = jnp.zeros((batch_p, din_p), jnp.float32)
    x = x.at[:batch, :in_dims].set(state.astype(jnp.float32))

    w_itemsize = jnp.dtype(w1.dtype).itemsize
    weight_bytes = (w1.size + w2.size + w3.size) * w_itemsize + b.size * 4
    flops = 2 * batch_p * (din_p * d1_p + d1_p * d2_p + d2_p * dout_p)
    bytes_accessed = x.size * 4 + batch_p * dout_p * 4 + weight_bytes

    # Scoped-VMEM budget: double-buffered x/out tiles + (possibly double-buffered)
    # resident weights + intermediates, with 2x headroom; clamped to the 64 MiB
    # physical VMEM of a v7x TensorCore (well within v5e/v6e's 128 MiB).
    tile_bytes = 2 * tb * (din_p + dout_p) * 4
    interm_bytes = 4 * tb * (d1_p + d2_p) * 4
    vmem_limit = int(min(max(2 * (2 * weight_bytes + tile_bytes + interm_bytes),
                             32 << 20), 64 << 20))

    def run(single_buffer_weights):
        if single_buffer_weights:
            # Constant-index resident block: no need to double-buffer -> half the
            # VMEM footprint for the stationary weights/biases.
            def resident(shape):
                return pl.BlockSpec(shape, lambda i: (0,) * len(shape),
                                    pipeline_mode=pl.Buffered(1))
        else:
            def resident(shape):
                return pl.BlockSpec(shape, lambda i: (0,) * len(shape))

        return pl.pallas_call(
            _dqn_kernel,
            out_shape=jax.ShapeDtypeStruct((batch_p, dout_p), jnp.float32),
            grid=grid,
            in_specs=[
                pl.BlockSpec((tb, din_p), lambda i: (i, 0)),  # x tile streams per step
                resident((din_p, d1_p)),                       # weights stay resident
                resident((d1_p, d2_p)),
                resident((d2_p, dout_p)),
                resident((8, dmax)),                           # packed biases resident
            ],
            out_specs=pl.BlockSpec((tb, dout_p), lambda i: (i, 0)),
            compiler_params=pltpu.CompilerParams(
                dimension_semantics=("parallel",),  # shard batch tiles across TCs (v7x)
                vmem_limit_bytes=vmem_limit,
            ),
            cost_estimate=pl.CostEstimate(
                flops=flops, transcendentals=0, bytes_accessed=bytes_accessed),
        )(x, w1, w2, w3, b)

    if hasattr(pl, "Buffered"):
        try:
            out_padded = run(True)
        except Exception:
            # pipeline_mode=Buffered(1) not supported by this jax/TPU build ->
            # fall back to default (double-buffered) resident blocks.
            out_padded = run(False)
    else:
        out_padded = run(False)

    # Slice off batch padding and the zero-padded action columns (the in-kernel
    # store stays lane-dense; this narrow slice happens once in XLA).
    return out_padded[:batch, :n_actions]


def init_params(key, input_dims, fc1_dims, fc2_dims, n_actions):
    """Deterministic init mimicking nn.Linear (uniform(-1/sqrt(fan_in), 1/sqrt(fan_in)))."""
    ks = jax.random.split(key, 6)

    def linear(kw, kb, fan_in, fan_out):
        bound = 1.0 / jnp.sqrt(fan_in)
        w = jax.random.uniform(kw, (fan_out, fan_in), jnp.float32, -bound, bound)
        b = jax.random.uniform(kb, (fan_out,), jnp.float32, -bound, bound)
        return w, b

    w1, b1 = linear(ks[0], ks[1], input_dims, fc1_dims)
    w2, b2 = linear(ks[2], ks[3], fc1_dims, fc2_dims)
    w3, b3 = linear(ks[4], ks[5], fc2_dims, n_actions)
    return {"w1": w1, "b1": b1, "w2": w2, "b2": b2, "w3": w3, "b3": b3}


# TODO(synk): Adam optimizer, MSELoss, and checkpoint save/load from the PyTorch
# module are training / file-IO machinery with no Pallas forward-pass equivalent.

if __name__ == "__main__":
    key = jax.random.PRNGKey(0)
    k_params, k_state = jax.random.split(key)

    # Small shapes consistent with the module's forward (pure MLP on a flat state).
    batch, input_dims, fc1_dims, fc2_dims, n_actions = 8, 8, 32, 32, 4

    params = init_params(k_params, input_dims, fc1_dims, fc2_dims, n_actions)
    prepared = prepare_params(params)  # one-time pad / transpose / pack (not per-call)
    state = jax.random.normal(k_state, (batch, input_dims), jnp.float32)

    actions = deep_q_network_forward(state, prepared)
    jax.block_until_ready(actions)

    # Pure-JAX f32 reference (PyTorch weight layout).  The kernel uses bf16 MXU
    # operands with f32 accumulation, so compare with a bf16-appropriate tolerance.
    h1 = jnp.maximum(state @ params["w1"].T + params["b1"], 0.0)
    h2 = jnp.maximum(h1 @ params["w2"].T + params["b2"], 0.0)
    ref = h2 @ params["w3"].T + params["b3"]
    assert actions.shape == (batch, n_actions)
    max_err = float(jnp.max(jnp.abs(actions - ref)))
    assert jnp.allclose(actions, ref, atol=5e-2, rtol=5e-2), (
        f"mismatch vs reference: max abs err = {max_err}")

    print("KERNEL_OK")
</pallas_src>

<mosaic_0001>
module attributes {stable_mosaic.version = 11 : i64} {
  func.func @_dqn_kernel(%arg0: i32, %arg1: memref<8x128xf32, #tpu.memory_space<vmem>>, %arg2: memref<128x128xbf16, #tpu.memory_space<vmem>>, %arg3: memref<128x128xbf16, #tpu.memory_space<vmem>>, %arg4: memref<128x128xbf16, #tpu.memory_space<vmem>>, %arg5: memref<8x128xf32, #tpu.memory_space<vmem>>, %arg6: memref<8x128xf32, #tpu.memory_space<vmem>>) attributes {dimension_semantics = [#tpu.dimension_semantics<parallel>], iteration_bounds = array<i64: 1>, scalar_prefetch = 0 : i64, scratch_operands = 0 : i64, tpu.core_type = #tpu.core_type<tc>, window_params = [{transform_indices = @transform_0, window_bounds = array<i64: 8, 128>}, {pipeline_mode = #tpu.pipeline_mode<synchronous>, transform_indices = @transform_1, window_bounds = array<i64: 128, 128>}, {pipeline_mode = #tpu.pipeline_mode<synchronous>, transform_indices = @transform_2, window_bounds = array<i64: 128, 128>}, {pipeline_mode = #tpu.pipeline_mode<synchronous>, transform_indices = @transform_3, window_bounds = array<i64: 128, 128>}, {pipeline_mode = #tpu.pipeline_mode<synchronous>, transform_indices = @transform_4, window_bounds = array<i64: 8, 128>}, {transform_indices = @transform_5, window_bounds = array<i64: 8, 128>}]} {
    %c0 = arith.constant 0 : index
    %c0_0 = arith.constant 0 : index
    %0 = vector.load %arg1[%c0, %c0_0] : memref<8x128xf32, #tpu.memory_space<vmem>>, vector<8x128xf32>
    %1 = arith.truncf %0 : vector<8x128xf32> to vector<8x128xbf16>
    %c0_1 = arith.constant 0 : index
    %c0_2 = arith.constant 0 : index
    %2 = vector.load %arg2[%c0_1, %c0_2] : memref<128x128xbf16, #tpu.memory_space<vmem>>, vector<128x128xbf16>
    %cst = arith.constant dense<0.000000e+00> : vector<8x128xf32>
    %3 = tpu.matmul %1, %2, %cst {dimension_numbers = #tpu.dot_dimension_numbers<[1], [0], [0], [1], [0, 0, 1, 1], [], []>} : vector<8x128xbf16>, vector<128x128xbf16>, vector<8x128xf32> -> vector<8x128xf32>
    %c0_3 = arith.constant 0 : index
    %c0_4 = arith.constant 0 : index
    %4 = vector.load %arg5[%c0_3, %c0_4] : memref<8x128xf32, #tpu.memory_space<vmem>>, vector<1x128xf32>
    %5 = vector.broadcast %4 : vector<1x128xf32> to vector<8x128xf32>
    %6 = arith.addf %3, %5 : vector<8x128xf32>
    %cst_5 = arith.constant 0.000000e+00 : f32
    %7 = vector.broadcast %cst_5 : f32 to vector<8x128xf32>
    %8 = arith.maximumf %6, %7 : vector<8x128xf32>
    %9 = arith.truncf %8 : vector<8x128xf32> to vector<8x128xbf16>
    %c0_6 = arith.constant 0 : index
    %c0_7 = arith.constant 0 : index
    %10 = vector.load %arg3[%c0_6, %c0_7] : memref<128x128xbf16, #tpu.memory_space<vmem>>, vector<128x128xbf16>
    %cst_8 = arith.constant dense<0.000000e+00> : vector<8x128xf32>
    %11 = tpu.matmul %9, %10, %cst_8 {dimension_numbers = #tpu.dot_dimension_numbers<[1], [0], [0], [1], [0, 0, 1, 1], [], []>} : vector<8x128xbf16>, vector<128x128xbf16>, vector<8x128xf32> -> vector<8x128xf32>
    %c1 = arith.constant 1 : index
    %c0_9 = arith.constant 0 : index
    %12 = vector.load %arg5[%c1, %c0_9] : memref<8x128xf32, #tpu.memory_space<vmem>>, vector<1x128xf32>
    %13 = vector.broadcast %12 : vector<1x128xf32> to vector<8x128xf32>
    %14 = arith.addf %11, %13 : vector<8x128xf32>
    %cst_10 = arith.constant 0.000000e+00 : f32
    %15 = vector.broadcast %cst_10 : f32 to vector<8x128xf32>
    %16 = arith.maximumf %14, %15 : vector<8x128xf32>
    %17 = arith.truncf %16 : vector<8x128xf32> to vector<8x128xbf16>
    %c0_11 = arith.constant 0 : index
    %c0_12 = arith.constant 0 : index
    %18 = vector.load %arg4[%c0_11, %c0_12] : memref<128x128xbf16, #tpu.memory_space<vmem>>, vector<128x128xbf16>
    %cst_13 = arith.constant dense<0.000000e+00> : vector<8x128xf32>
    %19 = tpu.matmul %17, %18, %cst_13 {dimension_numbers = #tpu.dot_dimension_numbers<[1], [0], [0], [1], [0, 0, 1, 1], [], []>} : vector<8x128xbf16>, vector<128x128xbf16>, vector<8x128xf32> -> vector<8x128xf32>
    %c2 = arith.constant 2 : index
    %c0_14 = arith.constant 0 : index
    %20 = vector.load %arg5[%c2, %c0_14] : memref<8x128xf32, #tpu.memory_space<vmem>>, vector<1x128xf32>
    %21 = vector.broadcast %20 : vector<1x128xf32> to vector<8x128xf32>
    %22 = arith.addf %19, %21 : vector<8x128xf32>
    %c0_15 = arith.constant 0 : index
    %c0_16 = arith.constant 0 : index
    %23 = vector.load %arg6[%c0_15, %c0_16] : memref<8x128xf32, #tpu.memory_space<vmem>>, vector<8x128xf32>
    tpu.vector_store %arg6[%c0_15, %c0_16], %22 {strides = array<i32>} : memref<8x128xf32, #tpu.memory_space<vmem>>, vector<8x128xf32>,
    return
  }
  func.func @transform_0(%arg0: i32) -> (i32, i32) {
    %c0_i32 = arith.constant 0 : i32
    %c0_i32_0 = arith.constant 0 : i32
    return %arg0, %c0_i32 : i32, i32
  }
  func.func @transform_1(%arg0: i32) -> (i32, i32) {
    %c0_i32 = arith.constant 0 : i32
    %c0_i32_0 = arith.constant 0 : i32
    %c0_i32_1 = arith.constant 0 : i32
    return %c0_i32, %c0_i32_0 : i32, i32
  }
  func.func @transform_2(%arg0: i32) -> (i32, i32) {
    %c0_i32 = arith.constant 0 : i32
    %c0_i32_0 = arith.constant 0 : i32
    %c0_i32_1 = arith.constant 0 : i32
    return %c0_i32, %c0_i32_0 : i32, i32
  }
  func.func @transform_3(%arg0: i32) -> (i32, i32) {
    %c0_i32 = arith.constant 0 : i32
    %c0_i32_0 = arith.constant 0 : i32
    %c0_i32_1 = arith.constant 0 : i32
    return %c0_i32, %c0_i32_0 : i32, i32
  }
  func.func @transform_4(%arg0: i32) -> (i32, i32) {
    %c0_i32 = arith.constant 0 : i32
    %c0_i32_0 = arith.constant 0 : i32
    %c0_i32_1 = arith.constant 0 : i32
    return %c0_i32, %c0_i32_0 : i32, i32
  }
  func.func @transform_5(%arg0: i32) -> (i32, i32) {
    %c0_i32 = arith.constant 0 : i32
    %c0_i32_0 = arith.constant 0 : i32
    return %arg0, %c0_i32 : i32, i32
  }
}

module attributes {stable_mosaic.version = 11 : i64} {
  func.func @_dqn_kernel(%arg0: i32, %arg1: memref<8x128xf32, #tpu.memory_space<vmem>>, %arg2: memref<128x128xbf16, #tpu.memory_space<vmem>>, %arg3: memref<128x128xbf16, #tpu.memory_space<vmem>>, %arg4: memref<128x128xbf16, #tpu.memory_space<vmem>>, %arg5: memref<8x128xf32, #tpu.memory_space<vmem>>, %arg6: memref<8x128xf32, #tpu.memory_space<vmem>>) attributes {dimension_semantics = [#tpu.dimension_semantics<parallel>], iteration_bounds = array<i64: 1>, scalar_prefetch = 0 : i64, scratch_operands = 0 : i64, tpu.core_type = #tpu.core_type<tc>, window_params = [{transform_indices = @transform_0, window_bounds = array<i64: 8, 128>}, {pipeline_mode = #tpu.pipeline_mode<synchronous>, transform_indices = @transform_1, window_bounds = array<i64: 128, 128>}, {pipeline_mode = #tpu.pipeline_mode<synchronous>, transform_indices = @transform_2, window_bounds = array<i64: 128, 128>}, {pipeline_mode = #tpu.pipeline_mode<synchronous>, transform_indices = @transform_3, window_bounds = array<i64: 128, 128>}, {pipeline_mode = #tpu.pipeline_mode<synchronous>, transform_indices = @transform_4, window_bounds = array<i64: 8, 128>}, {transform_indices = @transform_5, window_bounds = array<i64: 8, 128>}]} {
    %c0 = arith.constant 0 : index
    %c0_0 = arith.constant 0 : index
    %0 = vector.load %arg1[%c0, %c0_0] : memref<8x128xf32, #tpu.memory_space<vmem>>, vector<8x128xf32>
    %1 = arith.truncf %0 : vector<8x128xf32> to vector<8x128xbf16>
    %c0_1 = arith.constant 0 : index
    %c0_2 = arith.constant 0 : index
    %2 = vector.load %arg2[%c0_1, %c0_2] : memref<128x128xbf16, #tpu.memory_space<vmem>>, vector<128x128xbf16>
    %cst = arith.constant dense<0.000000e+00> : vector<8x128xf32>
    %3 = tpu.matmul %1, %2, %cst {dimension_numbers = #tpu.dot_dimension_numbers<[1], [0], [0], [1], [0, 0, 1, 1], [], []>} : vector<8x128xbf16>, vector<128x128xbf16>, vector<8x128xf32> -> vector<8x128xf32>
    %c0_3 = arith.constant 0 : index
    %c0_4 = arith.constant 0 : index
    %4 = vector.load %arg5[%c0_3, %c0_4] : memref<8x128xf32, #tpu.memory_space<vmem>>, vector<1x128xf32>
    %5 = vector.broadcast %4 : vector<1x128xf32> to vector<8x128xf32>
    %6 = arith.addf %3, %5 : vector<8x128xf32>
    %cst_5 = arith.constant 0.000000e+00 : f32
    %7 = vector.broadcast %cst_5 : f32 to vector<8x128xf32>
    %8 = arith.maximumf %6, %7 : vector<8x128xf32>
    %9 = arith.truncf %8 : vector<8x128xf32> to vector<8x128xbf16>
    %c0_6 = arith.constant 0 : index
    %c0_7 = arith.constant 0 : index
    %10 = vector.load %arg3[%c0_6, %c0_7] : memref<128x128xbf16, #tpu.memory_space<vmem>>, vector<128x128xbf16>
    %cst_8 = arith.constant dense<0.000000e+00> : vector<8x128xf32>
    %11 = tpu.matmul %9, %10, %cst_8 {dimension_numbers = #tpu.dot_dimension_numbers<[1], [0], [0], [1], [0, 0, 1, 1], [], []>} : vector<8x128xbf16>, vector<128x128xbf16>, vector<8x128xf32> -> vector<8x128xf32>
    %c1 = arith.constant 1 : index
    %c0_9 = arith.constant 0 : index
    %12 = vector.load %arg5[%c1, %c0_9] : memref<8x128xf32, #tpu.memory_space<vmem>>, vector<1x128xf32>
    %13 = vector.broadcast %12 : vector<1x128xf32> to vector<8x128xf32>
    %14 = arith.addf %11, %13 : vector<8x128xf32>
    %cst_10 = arith.constant 0.000000e+00 : f32
    %15 = vector.broadcast %cst_10 : f32 to vector<8x128xf32>
    %16 = arith.maximumf %14, %15 : vector<8x128xf32>
    %17 = arith.truncf %16 : vector<8x128xf32> to vector<8x128xbf16>
    %c0_11 = arith.constant 0 : index
    %c0_12 = arith.constant 0 : index
    %18 = vector.load %arg4[%c0_11, %c0_12] : memref<128x128xbf16, #tpu.memory_space<vmem>>, vector<128x128xbf16>
    %cst_13 = arith.constant dense<0.000000e+00> : vector<8x128xf32>
    %19 = tpu.matmul %17, %18, %cst_13 {dimension_numbers = #tpu.dot_dimension_numbers<[1], [0], [0], [1], [0, 0, 1, 1], [], []>} : vector<8x128xbf16>, vector<128x128xbf16>, vector<8x128xf32> -> vector<8x128xf32>
    %c2 = arith.constant 2 : index
    %c0_14 = arith.constant 0 : index
    %20 = vector.load %arg5[%c2, %c0_14] : memref<8x128xf32, #tpu.memory_space<vmem>>, vector<1x128xf32>
    %21 = vector.broadcast %20 : vector<1x128xf32> to vector<8x128xf32>
    %22 = arith.addf %19, %21 : vector<8x128xf32>
    %c0_15 = arith.constant 0 : index
    %c0_16 = arith.constant 0 : index
    %23 = vector.load %arg6[%c0_15, %c0_16] : memref<8x128xf32, #tpu.memory_space<vmem>>, vector<8x128xf32>
    tpu.vector_store %arg6[%c0_15, %c0_16], %22 {strides = array<i32>} : memref<8x128xf32, #tpu.memory_space<vmem>>, vector<8x128xf32>,
    return
  }
  func.func @transform_0(%arg0: i32) -> (i32, i32) {
    %c0_i32 = arith.constant 0 : i32
    %c0_i32_0 = arith.constant 0 : i32
    return %arg0, %c0_i32 : i32, i32
  }
  func.func @transform_1(%arg0: i32) -> (i32, i32) {
    %c0_i32 = arith.constant 0 : i32
    %c0_i32_0 = arith.constant 0 : i32
    %c0_i32_1 = arith.constant 0 : i32
    return %c0_i32, %c0_i32_0 : i32, i32
  }
  func.func @transform_2(%arg0: i32) -> (i32, i32) {
    %c0_i32 = arith.constant 0 : i32
    %c0_i32_0 = arith.constant 0 : i32
    %c0_i32_1 = arith.constant 0 : i32
    return %c0_i32, %c0_i32_0 : i32, i32
  }
  func.func @transform_3(%arg0: i32) -> (i32, i32) {
    %c0_i32 = arith.constant 0 : i32
    %c0_i32_0 = arith.constant 0 : i32
    %c0_i32_1 = arith.constant 0 : i32
    return %c0_i32, %c0_i32_0 : i32, i32
  }
  func.func @transform_4(%arg0: i32) -> (i32, i32) {
    %c0_i32 = arith.constant 0 : i32
    %c0_i32_0 = arith.constant 0 : i32
    %c0_i32_1 = arith.constant 0 : i32
    return %c0_i32, %c0_i32_0 : i32, i32
  }
  func.func @transform_5(%arg0: i32) -> (i32, i32) {
    %c0_i32 = arith.constant 0 : i32
    %c0_i32_0 = arith.constant 0 : i32
    return %arg0, %c0_i32 : i32, i32
  }
}

</mosaic_0001>

<bundles_post_ra>
// kernel: tpu_custom_call.1
= control target key start
LH: loop header
LB: loop body
LE: loop exit
PB: predicated region body
PF: predicated region fallthrough
CT: control target
= control target key end

     0   :  { %10 = vsyncpa [#allocation3], 0  ;;  %s838_s0 = inlined_call_operand.hbm [shape: f32[8,128], index: 0, kind: input, shape index: {}]   ;;  %s839_s1 = inlined_call_operand.hbm [shape: bf16[128,128], index: 1, kind: input, shape index: {}]   ;;  %s840_s2 = inlined_call_operand.hbm [shape: bf16[128,128], index: 2, kind: input, shape index: {}]   ;;  %s841_s3 = inlined_call_operand.hbm [shape: bf16[128,128], index: 3, kind: input, shape index: {}]   ;;  %s842_s4 = inlined_call_operand.vmem [shape: f32[8,128], index: 4, kind: input, shape index: {}]   ;;  %s843_s5 = inlined_call_operand.hbm [shape: f32[8,128], index: 5, kind: output, shape index: {}]  }
   0x1   :  { %11 = vsyncpa [#allocation6], 0 }
   0x2   :  { %12 = vsyncpa [#allocation9], 0 }
   0x3   :  { %13 = vsyncpa [#allocation4], 0  ;;  %s691_s18 = smov [#allocation5]   ;;  %s573_s22 = scalar_lea.hbm %s839_s1, 1024 }
   0x4   :  { %s29_s19 = sshll.u32 %s691_s18, 4  ;;  %p574_p0 = scmp.ne.s32.totalorder %s839_s1, %s573_s22  ;;  %s30_s19 = int_to_ptr.vmem [resolvable:$true] %s29_s19 }
   0x5   :  { %p577_p1 = scmp.lt.u32.totalorder %s573_s22, %s839_s1 }
   0x7   :  { %p579_p2 = pnand %p577_p1, %p574_p0 }
   0x9   :  { %582 = shalt.err (!%p579_p2)
}
   0xa   :  { %s583_s27 = scalar_lea.vmem %s30_s19, 1024  ;;  %p588_p4 = scmp.lt.s32.totalorder %s30_s19, %s30_s19 }
   0xb   :  { %p584_p3 = scmp.ne.s32.totalorder %s30_s19, %s583_s27  ;;  %p589_p5 = scmp.lt.s32.totalorder %s583_s27, %s583_s27 }
   0xd   :  { %p590_p6 = por %p589_p5, %p588_p4 }
   0xf   :  { %p591_p7 = pnand %p590_p6, %p584_p3 }
  0x11   :  { %594 = shalt.err (!%p591_p7)
}
  0x12   :  { %s692_s28 = smov 64   ;;  %s693_s29 = smov 4  }
  0x13   :  { %35 = dma.hbm_to_vmem [thread:$0]  %s839_s1, 1024, %s30_s19, [#allocation6], %s692_s28, %s692_s28, %s693_s29  }
  0x14   :  { %s694_s7 = smov [#allocation2]   ;;  %s695_s9 = smov [#allocation7]  }
  0x15   :  { %s20_s8 = sshll.u32 %s694_s7, 4  ;;  %s41_s10 = sshll.u32 %s695_s9, 4  ;;  %s21_s8 = int_to_ptr.vmem [resolvable:$true] %s20_s8  ;;  %s42_s10 = int_to_ptr.vmem [resolvable:$true] %s41_s10 }
  0x16   :  { %s595_s13 = scalar_lea.hbm %s838_s0, 128 }
  0x17   :  { %p596_p8 = scmp.ne.s32.totalorder %s838_s0, %s595_s13  ;;  %p599_p9 = scmp.lt.u32.totalorder %s595_s13, %s838_s0 }
  0x19   :  { %p601_p10 = pnand %p599_p9, %p596_p8 }
  0x1b   :  { %604 = shalt.err (!%p601_p10)
}
  0x1c   :  { %s605_s1 = scalar_lea.vmem %s21_s8, 128  ;;  %p610_p12 = scmp.lt.s32.totalorder %s21_s8, %s21_s8 }
  0x1d   :  { %p606_p11 = scmp.ne.s32.totalorder %s21_s8, %s605_s1  ;;  %p611_p13 = scmp.lt.s32.totalorder %s605_s1, %s605_s1 }
  0x1f   :  { %p612_p0 = por %p611_p13, %p610_p12 }
  0x21   :  { %p613_p1 = pnand %p612_p0, %p606_p11 }
  0x23   :  { %616 = shalt.err (!%p613_p1)
}
  0x24   :  { %23 = dma.hbm_to_vmem [thread:$0]  %s838_s0, 128, %s21_s8, [#allocation3]  }
  0x25   :  { %s617_s22 = scalar_lea.hbm %s840_s2, 1024 }
  0x26   :  { %p618_p2 = scmp.ne.s32.totalorder %s840_s2, %s617_s22  ;;  %p621_p3 = scmp.lt.u32.totalorder %s617_s22, %s840_s2 }
  0x28   :  { %p623_p4 = pnand %p621_p3, %p618_p2 }
  0x2a   :  { %626 = shalt.err (!%p623_p4)
}
  0x2b   :  { %s627_s27 = scalar_lea.vmem %s42_s10, 1024  ;;  %p632_p6 = scmp.lt.s32.totalorder %s42_s10, %s42_s10 }
  0x2c   :  { %p628_p5 = scmp.ne.s32.totalorder %s42_s10, %s627_s27  ;;  %p633_p7 = scmp.lt.s32.totalorder %s627_s27, %s627_s27 }
  0x2e   :  { %p634_p8 = por %p633_p7, %p632_p6 }
  0x30   :  { %p635_p9 = pnand %p634_p8, %p628_p5 }
  0x32   :  { %638 = shalt.err (!%p635_p9)
}
  0x33   :  { %47 = dma.hbm_to_vmem [thread:$0]  %s840_s2, 1024, %s42_s10, [#allocation6], %s692_s28, %s692_s28, %s693_s29  }
  0x34   :  { %s696_s6 = smov [#allocation8]   ;;  %s639_s11 = scalar_lea.hbm %s841_s3, 1024 }
  0x35   :  { %s53_s7 = sshll.u32 %s696_s6, 4  ;;  %p640_p10 = scmp.ne.s32.totalorder %s841_s3, %s639_s11  ;;  %s54_s7 = int_to_ptr.vmem [resolvable:$true] %s53_s7 }
  0x36   :  { %p643_p11 = scmp.lt.u32.totalorder %s639_s11, %s841_s3 }
  0x38   :  { %p645_p12 = pnand %p643_p11, %p640_p10 }
  0x3a   :  { %648 = shalt.err (!%p645_p12)
}
  0x3b   :  { %s649_s16 = scalar_lea.vmem %s54_s7, 1024  ;;  %p654_p0 = scmp.lt.s32.totalorder %s54_s7, %s54_s7 }
  0x3c   :  { %p650_p13 = scmp.ne.s32.totalorder %s54_s7, %s649_s16  ;;  %p655_p1 = scmp.lt.s32.totalorder %s649_s16, %s649_s16 }
  0x3e   :  { %p656_p2 = por %p655_p1, %p654_p0 }
  0x40   :  { %p657_p3 = pnand %p656_p2, %p650_p13 }
  0x42   :  { %660 = shalt.err (!%p657_p3)
}
  0x43   :  { %59 = dma.hbm_to_vmem [thread:$0]  %s841_s3, 1024, %s54_s7, [#allocation9], %s692_s28, %s692_s28, %s693_s29  }
  0x44   :  { %683 = dma.done.wait [#allocation3], 128  }
  0x45   :  { %684 = vsyncadd [#allocation3], 4294967168 }
  0x46   :  { %685 = dma.done.wait [#allocation6], 2048  }
  0x47   :  { %686 = vsyncadd [#allocation6], 4294965248 }
  0x48   :  { %687 = dma.done.wait [#allocation9], 1024  }
  0x49   :  { %688 = vsyncadd [#allocation9], 4294966272  ;;  %v697_v0 = vmov 0.0   ;;  %vm698_vm0 = vmmov 0   ;;  %v549_v1 = vld [vmem:[#allocation5] sm:$0xff]   ;;  %v550_v2 = vld [vmem:[#allocation5 + $0x8] sm:$0xff]  }
  0x4a   :  { %480 = vmatprep.subr.bf16.mxu0 %v697_v0  ;;  %496 = vmatprep.mubr.msk.bf16.mxu0 %vm698_vm0, %v697_v0  ;;  %v551_v3 = vld [vmem:[#allocation5 + $0x10] sm:$0xff]   ;;  %v557_v4 = vld [vmem:[#allocation7] sm:$0xff]   ;;  %v552_v5 = vld [vmem:[#allocation5 + $0x18] sm:$0xff]   ;;  %s699_s19 = smov [#allocation10]  }
  0x4b   :  { %500 = vmatprep.subr.bf16.mxu1 %v697_v0  ;;  %516 = vmatprep.mubr.msk.bf16.mxu1 %vm698_vm0, %v697_v0  ;;  %v558_v6 = vld [vmem:[#allocation7 + $0x8] sm:$0xff]   ;;  %v553_v7 = vld [vmem:[#allocation5 + $0x20] sm:$0xff]   ;;  %v559_v8 = vld [vmem:[#allocation7 + $0x10] sm:$0xff]   ;;  %s415_s20 = sshll.u32 %s699_s19, 4  ;;  %s416_s20 = int_to_ptr.vmem [resolvable:$true] %s415_s20 }
  0x4c   :  { %481 = vmatpush3.bf16.msra.mxu0 %v549_v1  ;;  %501 = vmatpush3.bf16.msra.mxu1 %v557_v4  ;;  %v554_v9 = vld [vmem:[#allocation5 + $0x28] sm:$0xff]   ;;  %v560_v10 = vld [vmem:[#allocation7 + $0x18] sm:$0xff]   ;;  %v555_v11 = vld [vmem:[#allocation5 + $0x30] sm:$0xff]   ;;  %s661_s21 = scalar_lea.vmem %s416_s20, 128  ;;  %p666_p5 = scmp.lt.s32.totalorder %s416_s20, %s416_s20 }
  0x4d   :  { %482 = vmatprep.subr.bf16.mxu0 %v697_v0  ;;  %502 = vmatprep.subr.bf16.mxu1 %v697_v0  ;;  %v561_v12 = vld [vmem:[#allocation7 + $0x20] sm:$0xff]   ;;  %v556_v13 = vld [vmem:[#allocation5 + $0x38] sm:$0xff]   ;;  %v562_v15 = vld [vmem:[#allocation7 + $0x28] sm:$0xff]   ;;  %p662_p4 = scmp.ne.s32.totalorder %s416_s20, %s661_s21  ;;  %p667_p6 = scmp.lt.s32.totalorder %s661_s21, %s661_s21 }
  0x4e   :  { %v75_v14 = vld [vmem:[#allocation2] sm:$0xff]  ;;  %v563_v17 = vld [vmem:[#allocation7 + $0x30] sm:$0xff]   ;;  %v565_v19 = vld [vmem:[#allocation8] sm:$0xff]  }
  0x4f   :  { %v76_v16 = vpack.c.bf16 %v75_v14, %v75_v14  ;;  %v564_v18 = vld [vmem:[#allocation7 + $0x38] sm:$0xff]   ;;  %v566_v20 = vld [vmem:[#allocation8 + $0x8] sm:$0xff]   ;;  %v567_v21 = vld [vmem:[#allocation8 + $0x10] sm:$0xff]   ;;  %p668_p7 = por %p667_p6, %p666_p5 }
  0x50   :  { %483 = vmatpush3.bf16.msra.mxu0 %v550_v2  ;;  %503 = vmatpush3.bf16.msra.mxu1 %v558_v6  ;;  %v568_v22 = vld [vmem:[#allocation8 + $0x18] sm:$0xff]   ;;  %v569_v23 = vld [vmem:[#allocation8 + $0x20] sm:$0xff]   ;;  %v570_v24 = vld [vmem:[#allocation8 + $0x28] sm:$0xff]  }
  0x51   :  { %484 = vmatprep.subr.bf16.mxu0 %v697_v0  ;;  %504 = vmatprep.subr.bf16.mxu1 %v697_v0  ;;  %v426_v25 = vld [vmem:[%s842_s4] ss:$0 sm:$0xff]  ;;  %v571_v33 = vld [vmem:[#allocation8 + $0x30] sm:$0xff]   ;;  %v435_v35 = vld [vmem:[%s842_s4 + $0x1] ss:$0 sm:$0xff]  ;;  %p669_p8 = pnand %p668_p7, %p662_p4 }
  0x52   :  { %v572_v34 = vld [vmem:[#allocation8 + $0x38] sm:$0xff]  }
  0x53   :  { %v444_v43 = vld [vmem:[%s842_s4 + $0x2] ss:$0 sm:$0xff] }
  0x54   :  { %485 = vmatpush3.bf16.msra.mxu0 %v551_v3  ;;  %505 = vmatpush3.bf16.msra.mxu1 %v559_v8 }
  0x55   :  { %486 = vmatprep.subr.bf16.mxu0 %v697_v0  ;;  %506 = vmatprep.subr.bf16.mxu1 %v697_v0 }
  0x58   :  { %487 = vmatpush3.bf16.msra.mxu0 %v552_v5  ;;  %507 = vmatpush3.bf16.msra.mxu1 %v560_v10 }
  0x59   :  { %488 = vmatprep.subr.bf16.mxu0 %v697_v0  ;;  %508 = vmatprep.subr.bf16.mxu1 %v697_v0 }
  0x5c   :  { %489 = vmatpush3.bf16.msra.mxu0 %v553_v7  ;;  %509 = vmatpush3.bf16.msra.mxu1 %v561_v12 }
  0x5d   :  { %490 = vmatprep.subr.bf16.mxu0 %v697_v0  ;;  %510 = vmatprep.subr.bf16.mxu1 %v697_v0 }
  0x60   :  { %491 = vmatpush3.bf16.msra.mxu0 %v554_v9  ;;  %511 = vmatpush3.bf16.msra.mxu1 %v562_v15 }
  0x61   :  { %492 = vmatprep.subr.bf16.mxu0 %v697_v0  ;;  %512 = vmatprep.subr.bf16.mxu1 %v697_v0 }
  0x64   :  { %493 = vmatpush3.bf16.msra.mxu0 %v555_v11  ;;  %513 = vmatpush3.bf16.msra.mxu1 %v563_v17 }
  0x65   :  { %494 = vmatprep.subr.bf16.mxu0 %v697_v0  ;;  %514 = vmatprep.subr.bf16.mxu1 %v697_v0 }
  0x68   :  { %495 = vmatpush3.bf16.msra.mxu0 %v556_v13  ;;  %515 = vmatpush3.bf16.msra.mxu1 %v564_v18 }
  0x69   :  { %520 = vmatprep.subr.bf16.mxu0 %v697_v0 }
  0x6b   :  { %497 = vmatmul.mubr.bf16.vlgmr.msra.gmra.mrb[0].mxu0 %v76_v16 }
  0x6c   :  { %536 = vmatprep.mubr.msk.bf16.mxu0 %vm698_vm0, %v697_v0  ;;  %521 = vmatpush3.bf16.msra.mxu0 %v565_v19 }
  0x6d   :  { %522 = vmatprep.subr.bf16.mxu0 %v697_v0 }
  0x70   :  { %523 = vmatpush3.bf16.msra.mxu0 %v566_v20 }
  0x71   :  { %524 = vmatprep.subr.bf16.mxu0 %v697_v0 }
  0x74   :  { %525 = vmatpush3.bf16.msra.mxu0 %v567_v21 }
  0x75   :  { %526 = vmatprep.subr.bf16.mxu0 %v697_v0 }
  0x78   :  { %527 = vmatpush3.bf16.msra.mxu0 %v568_v22 }
  0x79   :  { %528 = vmatprep.subr.bf16.mxu0 %v697_v0 }
  0x7c   :  { %529 = vmatpush3.bf16.msra.mxu0 %v569_v23 }
  0x7d   :  { %530 = vmatprep.subr.bf16.mxu0 %v697_v0 }
  0x80   :  { %531 = vmatpush3.bf16.msra.mxu0 %v570_v24 }
  0x81   :  { %532 = vmatprep.subr.bf16.mxu0 %v697_v0 }
  0x84   :  { %533 = vmatpush3.bf16.msra.mxu0 %v571_v33 }
  0x85   :  { %534 = vmatprep.subr.bf16.mxu0 %v697_v0 }
  0x88   :  { %535 = vmatpush3.bf16.msra.mxu0 %v572_v34 }
 0x13e   :  { %v180_v26 = vpop.f32.mrb[0].mxu0 }
 0x13f   :  { %v181_v27 = vadd.f32 %v426_v25, %v180_v26  ;;  %v498_v28 = vpop.f32.mrb[1].mxu0 }
 0x140   :  { %v183_v29 = vpop.f32.mrb[2].mxu0 }
 0x141   :  { %v186_v30 = vmax.f32 %v181_v27, 0.0  ;;  %v499_v31 = vpop.f32.mrb[3].mxu0 }
 0x143   :  { %v187_v32 = vpack.c.bf16 %v186_v30, %v186_v30 }
 0x145   :  { %517 = vmatmul.mubr.bf16.vlgmr.msra.gmra.mrb[0].mxu1 %v187_v32 }
 0x218   :  { %v291_v36 = vpop.f32.mrb[0].mxu1 }
 0x219   :  { %v292_v37 = vadd.f32 %v435_v35, %v291_v36  ;;  %v518_v38 = vpop.f32.mrb[1].mxu1 }
 0x21a   :  { %v294_v39 = vpop.f32.mrb[2].mxu1 }
 0x21b   :  { %v297_v40 = vmax.f32 %v292_v37, 0.0  ;;  %v519_v41 = vpop.f32.mrb[3].mxu1 }
 0x21d   :  { %v298_v42 = vpack.c.bf16 %v297_v40, %v297_v40 }
 0x21f   :  { %537 = vmatmul.mubr.bf16.vlgmr.msra.gmra.mrb[4].mxu0 %v298_v42 }
 0x2f2   :  { %v402_v44 = vpop.f32.mrb[4].mxu0 }
 0x2f3   :  { %v403_v45 = vadd.f32 %v444_v43, %v402_v44  ;;  %v538_v46 = vpop.f32.mrb[5].mxu0 }
 0x2f4   :  { %v405_v47 = vpop.f32.mrb[6].mxu0 }
 0x2f5   :  { %408 = vst [vmem:[#allocation10] sm:$0xff] %v403_v45  ;;  %v539_v48 = vpop.f32.mrb[7].mxu0 }
 0x2f6   :  { %672 = shalt.err (!%p669_p8)
}
 0x2f7   :  { %s673_s4 = scalar_lea.hbm %s843_s5, 128 }
 0x2f8   :  { %p674_p9 = scmp.ne.s32.totalorder %s843_s5, %s673_s4  ;;  %p677_p10 = scmp.lt.u32.totalorder %s673_s4, %s843_s5 }
 0x2fa   :  { %p679_p11 = pnand %p677_p10, %p674_p9 }
 0x2fc   :  { %682 = shalt.err (!%p679_p11)
}
 0x2fd   :  { %418 = dma.vmem_to_hbm [thread:$0]  %s416_s20, 128, %s843_s5, [#allocation4]  }
 0x2fe   :  { %689 = dma.done.wait [#allocation4], 128  }
 0x2ff   :  { %690 = vsyncadd [#allocation4], 4294967168 }
 0x300   :  { %422 = vsyncpa [#allocation3], 1 }
 0x301   :  { %423 = vsyncpa [#allocation6], 1 }
 0x302   :  { %424 = vsyncpa [#allocation9], 1 }
 0x303   :  { %425 = vsyncpa [#allocation4], 1 }

// kernel: tpu_custom_call.1
= control target key start
LH: loop header
LB: loop body
LE: loop exit
PB: predicated region body
PF: predicated region fallthrough
CT: control target
= control target key end

     0   :  { %10 = vsyncpa [#allocation3], 0  ;;  %s838_s0 = inlined_call_operand.hbm [shape: f32[8,128], index: 0, kind: input, shape index: {}]   ;;  %s839_s1 = inlined_call_operand.hbm [shape: bf16[128,128], index: 1, kind: input, shape index: {}]   ;;  %s840_s2 = inlined_call_operand.hbm [shape: bf16[128,128], index: 2, kind: input, shape index: {}]   ;;  %s841_s3 = inlined_call_operand.hbm [shape: bf16[128,128], index: 3, kind: input, shape index: {}]   ;;  %s842_s4 = inlined_call_operand.vmem [shape: f32[8,128], index: 4, kind: input, shape index: {}]   ;;  %s843_s5 = inlined_call_operand.hbm [shape: f32[8,128], index: 5, kind: output, shape index: {}]  }
   0x1   :  { %11 = vsyncpa [#allocation6], 0 }
   0x2   :  { %12 = vsyncpa [#allocation9], 0 }
   0x3   :  { %13 = vsyncpa [#allocation4], 0  ;;  %s691_s18 = smov [#allocation5]   ;;  %s573_s22 = scalar_lea.hbm %s839_s1, 1024 }
   0x4   :  { %s29_s19 = sshll.u32 %s691_s18, 4  ;;  %p574_p0 = scmp.ne.s32.totalorder %s839_s1, %s573_s22  ;;  %s30_s19 = int_to_ptr.vmem [resolvable:$true] %s29_s19 }
   0x5   :  { %p577_p1 = scmp.lt.u32.totalorder %s573_s22, %s839_s1 }
   0x7   :  { %p579_p2 = pnand %p577_p1, %p574_p0 }
   0x9   :  { %582 = shalt.err (!%p579_p2)
}
   0xa   :  { %s583_s27 = scalar_lea.vmem %s30_s19, 1024  ;;  %p588_p4 = scmp.lt.s32.totalorder %s30_s19, %s30_s19 }
   0xb   :  { %p584_p3 = scmp.ne.s32.totalorder %s30_s19, %s583_s27  ;;  %p589_p5 = scmp.lt.s32.totalorder %s583_s27, %s583_s27 }
   0xd   :  { %p590_p6 = por %p589_p5, %p588_p4 }
   0xf   :  { %p591_p7 = pnand %p590_p6, %p584_p3 }
  0x11   :  { %594 = shalt.err (!%p591_p7)
}
  0x12   :  { %s692_s28 = smov 64   ;;  %s693_s29 = smov 4  }
  0x13   :  { %35 = dma.hbm_to_vmem [thread:$0]  %s839_s1, 1024, %s30_s19, [#allocation6], %s692_s28, %s692_s28, %s693_s29  }
  0x14   :  { %s694_s7 = smov [#allocation2]   ;;  %s695_s9 = smov [#allocation7]  }
  0x15   :  { %s20_s8 = sshll.u32 %s694_s7, 4  ;;  %s41_s10 = sshll.u32 %s695_s9, 4  ;;  %s21_s8 = int_to_ptr.vmem [resolvable:$true] %s20_s8  ;;  %s42_s10 = int_to_ptr.vmem [resolvable:$true] %s41_s10 }
  0x16   :  { %s595_s13 = scalar_lea.hbm %s838_s0, 128 }
  0x17   :  { %p596_p8 = scmp.ne.s32.totalorder %s838_s0, %s595_s13  ;;  %p599_p9 = scmp.lt.u32.totalorder %s595_s13, %s838_s0 }
  0x19   :  { %p601_p10 = pnand %p599_p9, %p596_p8 }
  0x1b   :  { %604 = shalt.err (!%p601_p10)
}
  0x1c   :  { %s605_s1 = scalar_lea.vmem %s21_s8, 128  ;;  %p610_p12 = scmp.lt.s32.totalorder %s21_s8, %s21_s8 }
  0x1d   :  { %p606_p11 = scmp.ne.s32.totalorder %s21_s8, %s605_s1  ;;  %p611_p13 = scmp.lt.s32.totalorder %s605_s1, %s605_s1 }
  0x1f   :  { %p612_p0 = por %p611_p13, %p610_p12 }
  0x21   :  { %p613_p1 = pnand %p612_p0, %p606_p11 }
  0x23   :  { %616 = shalt.err (!%p613_p1)
}
  0x24   :  { %23 = dma.hbm_to_vmem [thread:$0]  %s838_s0, 128, %s21_s8, [#allocation3]  }
  0x25   :  { %s617_s22 = scalar_lea.hbm %s840_s2, 1024 }
  0x26   :  { %p618_p2 = scmp.ne.s32.totalorder %s840_s2, %s617_s22  ;;  %p621_p3 = scmp.lt.u32.totalorder %s617_s22, %s840_s2 }
  0x28   :  { %p623_p4 = pnand %p621_p3, %p618_p2 }
  0x2a   :  { %626 = shalt.err (!%p623_p4)
}
  0x2b   :  { %s627_s27 = scalar_lea.vmem %s42_s10, 1024  ;;  %p632_p6 = scmp.lt.s32.totalorder %s42_s10, %s42_s10 }
  0x2c   :  { %p628_p5 = scmp.ne.s32.totalorder %s42_s10, %s627_s27  ;;  %p633_p7 = scmp.lt.s32.totalorder %s627_s27, %s627_s27 }
  0x2e   :  { %p634_p8 = por %p633_p7, %p632_p6 }
  0x30   :  { %p635_p9 = pnand %p634_p8, %p628_p5 }
  0x32   :  { %638 = shalt.err (!%p635_p9)
}
  0x33   :  { %47 = dma.hbm_to_vmem [thread:$0]  %s840_s2, 1024, %s42_s10, [#allocation6], %s692_s28, %s692_s28, %s693_s29  }
  0x34   :  { %s696_s6 = smov [#allocation8]   ;;  %s639_s11 = scalar_lea.hbm %s841_s3, 1024 }
  0x35   :  { %s53_s7 = sshll.u32 %s696_s6, 4  ;;  %p640_p10 = scmp.ne.s32.totalorder %s841_s3, %s639_s11  ;;  %s54_s7 = int_to_ptr.vmem [resolvable:$true] %s53_s7 }
  0x36   :  { %p643_p11 = scmp.lt.u32.totalorder %s639_s11, %s841_s3 }
  0x38   :  { %p645_p12 = pnand %p643_p11, %p640_p10 }
  0x3a   :  { %648 = shalt.err (!%p645_p12)
}
  0x3b   :  { %s649_s16 = scalar_lea.vmem %s54_s7, 1024  ;;  %p654_p0 = scmp.lt.s32.totalorder %s54_s7, %s54_s7 }
  0x3c   :  { %p650_p13 = scmp.ne.s32.totalorder %s54_s7, %s649_s16  ;;  %p655_p1 = scmp.lt.s32.totalorder %s649_s16, %s649_s16 }
  0x3e   :  { %p656_p2 = por %p655_p1, %p654_p0 }
  0x40   :  { %p657_p3 = pnand %p656_p2, %p650_p13 }
  0x42   :  { %660 = shalt.err (!%p657_p3)
}
  0x43   :  { %59 = dma.hbm_to_vmem [thread:$0]  %s841_s3, 1024, %s54_s7, [#allocation9], %s692_s28, %s692_s28, %s693_s29  }
  0x44   :  { %683 = dma.done.wait [#allocation3], 128  }
  0x45   :  { %684 = vsyncadd [#allocation3], 4294967168 }
  0x46   :  { %685 = dma.done.wait [#allocation6], 2048  }
  0x47   :  { %686 = vsyncadd [#allocation6], 4294965248 }
  0x48   :  { %687 = dma.done.wait [#allocation9], 1024  }
  0x49   :  { %688 = vsyncadd [#allocation9], 4294966272  ;;  %v697_v0 = vmov 0.0   ;;  %vm698_vm0 = vmmov 0   ;;  %v549_v1 = vld [vmem:[#allocation5] sm:$0xff]   ;;  %v550_v2 = vld [vmem:[#allocation5 + $0x8] sm:$0xff]  }
  0x4a   :  { %480 = vmatprep.subr.bf16.mxu0 %v697_v0  ;;  %496 = vmatprep.mubr.msk.bf16.mxu0 %vm698_vm0, %v697_v0  ;;  %v551_v3 = vld [vmem:[#allocation5 + $0x10] sm:$0xff]   ;;  %v557_v4 = vld [vmem:[#allocation7] sm:$0xff]   ;;  %v552_v5 = vld [vmem:[#allocation5 + $0x18] sm:$0xff]   ;;  %s699_s19 = smov [#allocation10]  }
  0x4b   :  { %500 = vmatprep.subr.bf16.mxu1 %v697_v0  ;;  %516 = vmatprep.mubr.msk.bf16.mxu1 %vm698_vm0, %v697_v0  ;;  %v558_v6 = vld [vmem:[#allocation7 + $0x8] sm:$0xff]   ;;  %v553_v7 = vld [vmem:[#allocation5 + $0x20] sm:$0xff]   ;;  %v559_v8 = vld [vmem:[#allocation7 + $0x10] sm:$0xff]   ;;  %s415_s20 = sshll.u32 %s699_s19, 4  ;;  %s416_s20 = int_to_ptr.vmem [resolvable:$true] %s415_s20 }
  0x4c   :  { %481 = vmatpush3.bf16.msra.mxu0 %v549_v1  ;;  %501 = vmatpush3.bf16.msra.mxu1 %v557_v4  ;;  %v554_v9 = vld [vmem:[#allocation5 + $0x28] sm:$0xff]   ;;  %v560_v10 = vld [vmem:[#allocation7 + $0x18] sm:$0xff]   ;;  %v555_v11 = vld [vmem:[#allocation5 + $0x30] sm:$0xff]   ;;  %s661_s21 = scalar_lea.vmem %s416_s20, 128  ;;  %p666_p5 = scmp.lt.s32.totalorder %s416_s20, %s416_s20 }
  0x4d   :  { %482 = vmatprep.subr.bf16.mxu0 %v697_v0  ;;  %502 = vmatprep.subr.bf16.mxu1 %v697_v0  ;;  %v561_v12 = vld [vmem:[#allocation7 + $0x20] sm:$0xff]   ;;  %v556_v13 = vld [vmem:[#allocation5 + $0x38] sm:$0xff]   ;;  %v562_v15 = vld [vmem:[#allocation7 + $0x28] sm:$0xff]   ;;  %p662_p4 = scmp.ne.s32.totalorder %s416_s20, %s661_s21  ;;  %p667_p6 = scmp.lt.s32.totalorder %s661_s21, %s661_s21 }
  0x4e   :  { %v75_v14 = vld [vmem:[#allocation2] sm:$0xff]  ;;  %v563_v17 = vld [vmem:[#allocation7 + $0x30] sm:$0xff]   ;;  %v565_v19 = vld [vmem:[#allocation8] sm:$0xff]  }
  0x4f   :  { %v76_v16 = vpack.c.bf16 %v75_v14, %v75_v14  ;;  %v564_v18 = vld [vmem:[#allocation7 + $0x38] sm:$0xff]   ;;  %v566_v20 = vld [vmem:[#allocation8 + $0x8] sm:$0xff]   ;;  %v567_v21 = vld [vmem:[#allocation8 + $0x10] sm:$0xff]   ;;  %p668_p7 = por %p667_p6, %p666_p5 }
  0x50   :  { %483 = vmatpush3.bf16.msra.mxu0 %v550_v2  ;;  %503 = vmatpush3.bf16.msra.mxu1 %v558_v6  ;;  %v568_v22 = vld [vmem:[#allocation8 + $0x18] sm:$0xff]   ;;  %v569_v23 = vld [vmem:[#allocation8 + $0x20] sm:$0xff]   ;;  %v570_v24 = vld [vmem:[#allocation8 + $0x28] sm:$0xff]  }
  0x51   :  { %484 = vmatprep.subr.bf16.mxu0 %v697_v0  ;;  %504 = vmatprep.subr.bf16.mxu1 %v697_v0  ;;  %v426_v25 = vld [vmem:[%s842_s4] ss:$0 sm:$0xff]  ;;  %v571_v33 = vld [vmem:[#allocation8 + $0x30] sm:$0xff]   ;;  %v435_v35 = vld [vmem:[%s842_s4 + $0x1] ss:$0 sm:$0xff]  ;;  %p669_p8 = pnand %p668_p7, %p662_p4 }
  0x52   :  { %v572_v34 = vld [vmem:[#allocation8 + $0x38] sm:$0xff]  }
  0x53   :  { %v444_v43 = vld [vmem:[%s842_s4 + $0x2] ss:$0 sm:$0xff] }
  0x54   :  { %485 = vmatpush3.bf16.msra.mxu0 %v551_v3  ;;  %505 = vmatpush3.bf16.msra.mxu1 %v559_v8 }
  0x55   :  { %486 = vmatprep.subr.bf16.mxu0 %v697_v0  ;;  %506 = vmatprep.subr.bf16.mxu1 %v697_v0 }
  0x58   :  { %487 = vmatpush3.bf16.msra.mxu0 %v552_v5  ;;  %507 = vmatpush3.bf16.msra.mxu1 %v560_v10 }
  0x59   :  { %488 = vmatprep.subr.bf16.mxu0 %v697_v0  ;;  %508 = vmatprep.subr.bf16.mxu1 %v697_v0 }
  0x5c   :  { %489 = vmatpush3.bf16.msra.mxu0 %v553_v7  ;;  %509 = vmatpush3.bf16.msra.mxu1 %v561_v12 }
  0x5d   :  { %490 = vmatprep.subr.bf16.mxu0 %v697_v0  ;;  %510 = vmatprep.subr.bf16.mxu1 %v697_v0 }
  0x60   :  { %491 = vmatpush3.bf16.msra.mxu0 %v554_v9  ;;  %511 = vmatpush3.bf16.msra.mxu1 %v562_v15 }
  0x61   :  { %492 = vmatprep.subr.bf16.mxu0 %v697_v0  ;;  %512 = vmatprep.subr.bf16.mxu1 %v697_v0 }
  0x64   :  { %493 = vmatpush3.bf16.msra.mxu0 %v555_v11  ;;  %513 = vmatpush3.bf16.msra.mxu1 %v563_v17 }
  0x65   :  { %494 = vmatprep.subr.bf16.mxu0 %v697_v0  ;;  %514 = vmatprep.subr.bf16.mxu1 %v697_v0 }
  0x68   :  { %495 = vmatpush3.bf16.msra.mxu0 %v556_v13  ;;  %515 = vmatpush3.bf16.msra.mxu1 %v564_v18 }
  0x69   :  { %520 = vmatprep.subr.bf16.mxu0 %v697_v0 }
  0x6b   :  { %497 = vmatmul.mubr.bf16.vlgmr.msra.gmra.mrb[0].mxu0 %v76_v16 }
  0x6c   :  { %536 = vmatprep.mubr.msk.bf16.mxu0 %vm698_vm0, %v697_v0  ;;  %521 = vmatpush3.bf16.msra.mxu0 %v565_v19 }
  0x6d   :  { %522 = vmatprep.subr.bf16.mxu0 %v697_v0 }
  0x70   :  { %523 = vmatpush3.bf16.msra.mxu0 %v566_v20 }
  0x71   :  { %524 = vmatprep.subr.bf16.mxu0 %v697_v0 }
  0x74   :  { %525 = vmatpush3.bf16.msra.mxu0 %v567_v21 }
  0x75   :  { %526 = vmatprep.subr.bf16.mxu0 %v697_v0 }
  0x78   :  { %527 = vmatpush3.bf16.msra.mxu0 %v568_v22 }
  0x79   :  { %528 = vmatprep.subr.bf16.mxu0 %v697_v0 }
  0x7c   :  { %529 = vmatpush3.bf16.msra.mxu0 %v569_v23 }
  0x7d   :  { %530 = vmatprep.subr.bf16.mxu0 %v697_v0 }
  0x80   :  { %531 = vmatpush3.bf16.msra.mxu0 %v570_v24 }
  0x81   :  { %532 = vmatprep.subr.bf16.mxu0 %v697_v0 }
  0x84   :  { %533 = vmatpush3.bf16.msra.mxu0 %v571_v33 }
  0x85   :  { %534 = vmatprep.subr.bf16.mxu0 %v697_v0 }
  0x88   :  { %535 = vmatpush3.bf16.msra.mxu0 %v572_v34 }
 0x13e   :  { %v180_v26 = vpop.f32.mrb[0].mxu0 }
 0x13f   :  { %v181_v27 = vadd.f32 %v426_v25, %v180_v26  ;;  %v498_v28 = vpop.f32.mrb[1].mxu0 }
 0x140   :  { %v183_v29 = vpop.f32.mrb[2].mxu0 }
 0x141   :  { %v186_v30 = vmax.f32 %v181_v27, 0.0  ;;  %v499_v31 = vpop.f32.mrb[3].mxu0 }
 0x143   :  { %v187_v32 = vpack.c.bf16 %v186_v30, %v186_v30 }
 0x145   :  { %517 = vmatmul.mubr.bf16.vlgmr.msra.gmra.mrb[0].mxu1 %v187_v32 }
 0x218   :  { %v291_v36 = vpop.f32.mrb[0].mxu1 }
 0x219   :  { %v292_v37 = vadd.f32 %v435_v35, %v291_v36  ;;  %v518_v38 = vpop.f32.mrb[1].mxu1 }
 0x21a   :  { %v294_v39 = vpop.f32.mrb[2].mxu1 }
 0x21b   :  { %v297_v40 = vmax.f32 %v292_v37, 0.0  ;;  %v519_v41 = vpop.f32.mrb[3].mxu1 }
 0x21d   :  { %v298_v42 = vpack.c.bf16 %v297_v40, %v297_v40 }
 0x21f   :  { %537 = vmatmul.mubr.bf16.vlgmr.msra.gmra.mrb[4].mxu0 %v298_v42 }
 0x2f2   :  { %v402_v44 = vpop.f32.mrb[4].mxu0 }
 0x2f3   :  { %v403_v45 = vadd.f32 %v444_v43, %v402_v44  ;;  %v538_v46 = vpop.f32.mrb[5].mxu0 }
 0x2f4   :  { %v405_v47 = vpop.f32.mrb[6].mxu0 }
 0x2f5   :  { %408 = vst [vmem:[#allocation10] sm:$0xff] %v403_v45  ;;  %v539_v48 = vpop.f32.mrb[7].mxu0 }
 0x2f6   :  { %672 = shalt.err (!%p669_p8)
}
 0x2f7   :  { %s673_s4 = scalar_lea.hbm %s843_s5, 128 }
 0x2f8   :  { %p674_p9 = scmp.ne.s32.totalorder %s843_s5, %s673_s4  ;;  %p677_p10 = scmp.lt.u32.totalorder %s673_s4, %s843_s5 }
 0x2fa   :  { %p679_p11 = pnand %p677_p10, %p674_p9 }
 0x2fc   :  { %682 = shalt.err (!%p679_p11)
}
 0x2fd   :  { %418 = dma.vmem_to_hbm [thread:$0]  %s416_s20, 128, %s843_s5, [#allocation4]  }
 0x2fe   :  { %689 = dma.done.wait [#allocation4], 128  }
 0x2ff   :  { %690 = vsyncadd [#allocation4], 4294967168 }
 0x300   :  { %422 = vsyncpa [#allocation3], 1 }
 0x301   :  { %423 = vsyncpa [#allocation6], 1 }
 0x302   :  { %424 = vsyncpa [#allocation9], 1 }
 0x303   :  { %425 = vsyncpa [#allocation4], 1 }

</bundles_post_ra>
